<compile_context>
chip_gen: v7x
topology: tpu7x:2x2x1
jax: 0.10.0
libtpu: 0.0.40
codegen_flags: <defaults>
</compile_context>

<pallas_src>
import math

import jax
import jax.numpy as jnp
from jax.experimental import pallas as pl
from jax.experimental.pallas import tpu as pltpu


def _swish_kernel(x_ref, o_ref):
    x = x_ref[...]
    # f32 internal compute (exact torch SiLU semantics); sigmoid lowers to EUP.
    xf = x.astype(jnp.float32)
    o_ref[...] = (xf * jax.nn.sigmoid(xf)).astype(o_ref.dtype)


# Preferred lane widths (all multiples of 128); 512 first so large tensors get
# plenty of grid steps for megacore sharding while staying lane-dense.
_LANE_CANDIDATES = (512, 1024, 256, 128)


def _select_block_params():
    """Generation-aware (block_bytes, vmem_limit_bytes)."""
    try:
        vmem_bytes = int(pltpu.get_tpu_info().vmem_capacity_bytes)
    except Exception:
        vmem_bytes = 64 * 1024 * 1024  # conservative: assume v7x-sized VMEM
    if vmem_bytes <= 64 * 1024 * 1024:
        # v7x: fast HBM -> bigger blocks hide the ~0.35 us per-step overhead;
        # 4 live double-buffered blocks (~24 MiB) fit well under 48 MiB.
        return 6 * 1024 * 1024, 48 * 1024 * 1024
    # v5e / v6e: 128 MiB physical VMEM; 4 MiB blocks sit on the roofline plateau.
    return 4 * 1024 * 1024, 64 * 1024 * 1024


def _swish_2d(x2: jax.Array, rows: int, cols: int) -> jax.Array:
    """Run the swish kernel on a lane-dense (rows, cols) view."""
    itemsize = jnp.dtype(x2.dtype).itemsize
    block_bytes, vmem_limit = _select_block_params()
    # Sublane packing factor: 8 for 32-bit, 16 for 16-bit, 32 for 8-bit dtypes.
    sub = {4: 8, 2: 16, 1: 32}.get(itemsize, 8)

    if rows <= sub:
        # Single block equal to full array dims (legal even if rows % sub != 0).
        tr = rows
        grid = (1,)
    else:
        target_rows = max(sub, (block_bytes // (cols * itemsize)) // sub * sub)
        # At least 2 grid steps (rounded to an even count) so both v7x
        # TensorCores participate; more steps if blocks would exceed target.
        n_steps = max(2, pl.cdiv(rows, target_rows))
        if n_steps % 2:
            n_steps += 1
        tr = ((pl.cdiv(rows, n_steps) + sub - 1) // sub) * sub
        grid = (pl.cdiv(rows, tr),)  # ragged last block is masked by Pallas

    n = rows * cols
    return pl.pallas_call(
        _swish_kernel,
        out_shape=jax.ShapeDtypeStruct((rows, cols), x2.dtype),
        grid=grid,
        in_specs=[pl.BlockSpec((tr, cols), lambda i: (i, 0))],
        out_specs=pl.BlockSpec((tr, cols), lambda i: (i, 0)),
        compiler_params=pltpu.CompilerParams(
            dimension_semantics=("parallel",),  # v7x megacore sharding
            vmem_limit_bytes=vmem_limit,
        ),
        cost_estimate=pl.CostEstimate(
            flops=5 * n,
            transcendentals=n,
            bytes_accessed=2 * n * itemsize,
        ),
    )(x2)


def swish(x: jax.Array) -> jax.Array:
    """Elementwise swish: x * sigmoid(x). Matches torch semantics exactly."""
    orig_shape = x.shape
    dtype = x.dtype
    total = math.prod(orig_shape) if orig_shape else 1

    if total == 0:
        return x  # empty tensor: nothing to compute

    flat = x.reshape(-1)  # reshape of a contiguous array is free

    # Fast path: a lane width evenly divides the element count (no tail).
    for c in _LANE_CANDIDATES:
        if total % c == 0:
            out2 = _swish_2d(flat.reshape(total // c, c), total // c, c)
            return out2.reshape(orig_shape)

    # Odd element count: kernel on the 128-divisible bulk; finish the <=127
    # element tail with plain jnp (avoids whole-tensor pad/slice copies).
    rem = total % 128
    bulk = total - rem
    if bulk == 0:
        xf = flat.astype(jnp.float32)
        return (xf * jax.nn.sigmoid(xf)).astype(dtype).reshape(orig_shape)

    bulk_cols = 128
    for c in _LANE_CANDIDATES:
        if bulk % c == 0:
            bulk_cols = c
            break
    bulk_out = _swish_2d(
        flat[:bulk].reshape(bulk // bulk_cols, bulk_cols), bulk // bulk_cols, bulk_cols
    ).reshape(-1)

    tail = flat[bulk:].astype(jnp.float32)
    tail_out = (tail * jax.nn.sigmoid(tail)).astype(dtype)
    return jnp.concatenate([bulk_out, tail_out]).reshape(orig_shape)


if __name__ == "__main__":
    key = jax.random.PRNGKey(0)

    # Primary check: NCHW activation shape from the module's forward.
    x = jax.random.normal(key, (2, 4, 16, 16), dtype=jnp.float32)
    y = swish(x)
    jax.block_until_ready(y)
    y_ref = x * jax.nn.sigmoid(x)
    assert y.shape == x.shape and y.dtype == x.dtype
    assert jnp.allclose(y, y_ref, atol=1e-6, rtol=1e-6)

    # Odd element count (273 = 256 + 17): exercises bulk-kernel + jnp tail path.
    x2 = jax.random.normal(jax.random.PRNGKey(1), (3, 7, 13), dtype=jnp.float32)
    y2 = swish(x2)
    jax.block_until_ready(y2)
    assert jnp.allclose(y2, x2 * jax.nn.sigmoid(x2), atol=1e-6, rtol=1e-6)

    # bf16 input: exercises the multi-step even grid and 16-row sublane packing.
    x3 = jax.random.normal(jax.random.PRNGKey(2), (8, 64, 128), dtype=jnp.bfloat16)
    y3 = swish(x3)
    jax.block_until_ready(y3)
    x3f = x3.astype(jnp.float32)
    y3_ref = (x3f * jax.nn.sigmoid(x3f)).astype(jnp.bfloat16)
    assert y3.shape == x3.shape and y3.dtype == x3.dtype
    assert jnp.allclose(
        y3.astype(jnp.float32), y3_ref.astype(jnp.float32), atol=1e-2, rtol=1e-2
    )

    print("KERNEL_OK")
</pallas_src>

<mosaic_0001>
module attributes {stable_mosaic.version = 11 : i64} {
  func.func @_swish_kernel(%arg0: i32, %arg1: memref<4x512xf32, #tpu.memory_space<vmem>>, %arg2: memref<4x512xf32, #tpu.memory_space<vmem>>) attributes {dimension_semantics = [#tpu.dimension_semantics<parallel>], iteration_bounds = array<i64: 1>, scalar_prefetch = 0 : i64, scratch_operands = 0 : i64, tpu.core_type = #tpu.core_type<tc>, window_params = [{transform_indices = @transform_0, window_bounds = array<i64: 4, 512>}, {transform_indices = @transform_1, window_bounds = array<i64: 4, 512>}]} {
    %c0 = arith.constant 0 : index
    %c0_0 = arith.constant 0 : index
    %0 = vector.load %arg1[%c0, %c0_0] : memref<4x512xf32, #tpu.memory_space<vmem>>, vector<4x512xf32>
    %1 = arith.negf %0 : vector<4x512xf32>
    %2 = math.exp %1 : vector<4x512xf32>
    %cst = arith.constant 1.000000e+00 : f32
    %3 = vector.broadcast %cst : f32 to vector<4x512xf32>
    %4 = arith.addf %3, %2 : vector<4x512xf32>
    %5 = arith.divf %3, %4 : vector<4x512xf32>
    %6 = arith.mulf %0, %5 : vector<4x512xf32>
    %c0_1 = arith.constant 0 : index
    %c0_2 = arith.constant 0 : index
    %7 = vector.load %arg2[%c0_1, %c0_2] : memref<4x512xf32, #tpu.memory_space<vmem>>, vector<4x512xf32>
    tpu.vector_store %arg2[%c0_1, %c0_2], %6 {strides = array<i32>} : memref<4x512xf32, #tpu.memory_space<vmem>>, vector<4x512xf32>,
    return
  }
  func.func @transform_0(%arg0: i32) -> (i32, i32) {
    %c0_i32 = arith.constant 0 : i32
    %c0_i32_0 = arith.constant 0 : i32
    return %arg0, %c0_i32 : i32, i32
  }
  func.func @transform_1(%arg0: i32) -> (i32, i32) {
    %c0_i32 = arith.constant 0 : i32
    %c0_i32_0 = arith.constant 0 : i32
    return %arg0, %c0_i32 : i32, i32
  }
}

</mosaic_0001>

<bundles_post_ra>
// kernel: tpu_custom_call.1
= control target key start
LH: loop header
LB: loop body
LE: loop exit
PB: predicated region body
PF: predicated region fallthrough
CT: control target
= control target key end

     0   :  { %6 = vsyncpa [#allocation3], 0  ;;  %s150_s0 = inlined_call_operand.hbm [shape: f32[4,512], index: 0, kind: input, shape index: {}]   ;;  %s151_s1 = inlined_call_operand.hbm [shape: f32[4,512], index: 1, kind: output, shape index: {}]  }
   0x1   :  { %7 = vsyncpa [#allocation4], 0  ;;  %s114_s6 = smov [#allocation2]   ;;  %s66_s10 = scalar_lea.hbm %s150_s0, 256 }
   0x2   :  { %s14_s7 = sshll.u32 %s114_s6, 4  ;;  %p67_p0 = scmp.ne.s32.totalorder %s150_s0, %s66_s10  ;;  %s15_s7 = int_to_ptr.vmem [resolvable:$true] %s14_s7 }
   0x3   :  { %p70_p1 = scmp.lt.u32.totalorder %s66_s10, %s150_s0 }
   0x5   :  { %p72_p2 = pnand %p70_p1, %p67_p0 }
   0x7   :  { %75 = shalt.err (!%p72_p2)
}
   0x8   :  { %s76_s15 = scalar_lea.vmem %s15_s7, 256  ;;  %p81_p4 = scmp.lt.s32.totalorder %s15_s7, %s15_s7 }
   0x9   :  { %p77_p3 = scmp.ne.s32.totalorder %s15_s7, %s76_s15  ;;  %p82_p5 = scmp.lt.s32.totalorder %s76_s15, %s76_s15 }
   0xb   :  { %p83_p6 = por %p82_p5, %p81_p4 }
   0xd   :  { %p84_p7 = pnand %p83_p6, %p77_p3 }
   0xf   :  { %87 = shalt.err (!%p84_p7)
}
  0x10   :  { %17 = dma.hbm_to_vmem [thread:$0]  %s150_s0, 256, %s15_s7, [#allocation3]  }
  0x11   :  { %110 = dma.done.wait [#allocation3], 256  }
  0x12   :  { %111 = vsyncadd [#allocation3], 4294967040  ;;  %v21_v0 = vld [vmem:[#allocation2] sm:$0xff]  ;;  %v22_v1 = vld [vmem:[#allocation2 + $0x8] sm:$0xff]  ;;  %s115_s18 = smov [#allocation5]  }
  0x13   :  { %v54_v2 = vmul.f32 -1.442695, %v21_v0  ;;  %v55_v3 = vmul.f32 -1.442695, %v22_v1  ;;  %s45_s19 = sshll.u32 %s115_s18, 4  ;;  %s46_s19 = int_to_ptr.vmem [resolvable:$true] %s45_s19 }
  0x14   :  { %s88_s0 = scalar_lea.vmem %s46_s19, 256  ;;  %p93_p9 = scmp.lt.s32.totalorder %s46_s19, %s46_s19 }
  0x15   :  { %58 = vpow2.f32 %v54_v2  ;;  %p89_p8 = scmp.ne.s32.totalorder %s46_s19, %s88_s0  ;;  %p94_p10 = scmp.lt.s32.totalorder %s88_s0, %s88_s0 }
  0x16   :  { %60 = vpow2.f32 %v55_v3 }
  0x17   :  { %p95_p11 = por %p94_p10, %p93_p9 }
  0x19   :  { %p96_p12 = pnand %p95_p11, %p89_p8 }
  0x1f   :  { %v59_v4 = vpop.eup %58 }
  0x20   :  { %v61_v5 = vpop.eup %60  ;;  %v29_v6 = vadd.f32 1.0, %v59_v4 }
  0x21   :  { %v30_v7 = vadd.f32 1.0, %v61_v5 }
  0x22   :  { %62 = vrcp.f32 %v29_v6 }
  0x23   :  { %64 = vrcp.f32 %v30_v7 }
  0x2c   :  { %v63_v8 = vpop.eup %62 }
  0x2d   :  { %v65_v9 = vpop.eup %64  ;;  %v35_v10 = vmul.f32 %v63_v8, %v21_v0 }
  0x2e   :  { %v36_v11 = vmul.f32 %v65_v9, %v22_v1 }
  0x2f   :  { %37 = vst [vmem:[#allocation5] sm:$0xff] %v35_v10 }
  0x30   :  { %38 = vst [vmem:[#allocation5 + $0x8] sm:$0xff] %v36_v11 }
  0x31   :  { %99 = shalt.err (!%p96_p12)
}
  0x32   :  { %s100_s22 = scalar_lea.hbm %s151_s1, 256 }
  0x33   :  { %p101_p13 = scmp.ne.s32.totalorder %s151_s1, %s100_s22  ;;  %p104_p0 = scmp.lt.u32.totalorder %s100_s22, %s151_s1 }
  0x35   :  { %p106_p1 = pnand %p104_p0, %p101_p13 }
  0x37   :  { %109 = shalt.err (!%p106_p1)
}
  0x38   :  { %48 = dma.vmem_to_hbm [thread:$0]  %s46_s19, 256, %s151_s1, [#allocation4]  }
  0x39   :  { %112 = dma.done.wait [#allocation4], 256  }
  0x3a   :  { %113 = vsyncadd [#allocation4], 4294967040 }
  0x3b   :  { %52 = vsyncpa [#allocation3], 1 }
  0x3c   :  { %53 = vsyncpa [#allocation4], 1 }

</bundles_post_ra>
